<compile_context>
chip_gen: v5e
topology: v5e:2x2
jax: 0.10.0
libtpu: 0.0.40
codegen_flags: <defaults>
</compile_context>

<pallas_src>
import functools

import jax
import jax.numpy as jnp
from jax import lax
from jax.experimental import pallas as pl
from jax.experimental.pallas import tpu as pltpu


def _round_up(x, m):
    return (x + m - 1) // m * m


def _qformer_output_kernel(x_ref, w_ref, b_ref, res_ref, gamma_ref, beta_ref,
                           o_ref, acc_ref, *, eps, n_actual, n_padded):
    # x_ref:    (tm, tk)      hidden_states tile (intermediate features)
    # w_ref:    (n_pad, tk)   dense weight, native nn.Linear [N, K] layout
    # b_ref:    (1, n_pad)    dense bias (zero-padded past n_actual)
    # res_ref:  (tm, n_pad)   residual (input_tensor) tile (zero-padded)
    # gamma/beta_ref: (1, n_pad) LayerNorm affine params (zero-padded)
    # o_ref:    (tm, n_pad)   output tile (lane-dense)
    # acc_ref:  (tm, n_pad)   f32 accumulator scratch (persists over K axis)
    k = pl.program_id(1)
    nk = pl.num_programs(1)

    @pl.when(k == 0)
    def _init():
        acc_ref[...] = jnp.zeros_like(acc_ref)

    # Dense: x @ W^T on the MXU, accumulating in f32. The weight stays in its
    # native [N, K] layout; contraction is on dim 1 of both operands.
    acc_ref[...] += lax.dot_general(
        x_ref[...], w_ref[...],
        dimension_numbers=(((1,), (1,)), ((), ())),
        preferred_element_type=jnp.float32)

    @pl.when(k == nk - 1)
    def _finalize():
        h = acc_ref[...]
        h = h + b_ref[...].astype(jnp.float32)
        # Dropout is identity at inference.
        h = h + res_ref[...].astype(jnp.float32)

        inv_n = jnp.float32(1.0 / n_actual)
        if n_padded == n_actual:
            mean = jnp.sum(h, axis=-1, keepdims=True) * inv_n
            centered = h - mean
        else:
            # Padded feature lanes of h are exactly zero (weights / bias /
            # residual padded with zeros), so the sum is already exact; only
            # the variance needs masking.
            lane = lax.broadcasted_iota(jnp.int32, h.shape, 1)
            mask = lane < n_actual
            mean = jnp.sum(h, axis=-1, keepdims=True) * inv_n
            centered = jnp.where(mask, h - mean, 0.0)

        var = jnp.sum(centered * centered, axis=-1, keepdims=True) * inv_n
        inv = lax.rsqrt(var + eps)
        out = (centered * inv * gamma_ref[...].astype(jnp.float32)
               + beta_ref[...].astype(jnp.float32))
        o_ref[...] = out.astype(o_ref.dtype)


def chexagent_qformer_output(hidden_states, input_tensor, params, *,
                             eps=1e-12, tm=256, tk=512):
    """hidden_states: [B, S, K] (intermediate), input_tensor: [B, S, N] -> [B, S, N]."""
    w = params["dense_weight"]      # [N, K]  (native PyTorch nn.Linear layout)
    b = params["dense_bias"]        # [N]
    gamma = params["ln_weight"]     # [N]
    beta = params["ln_bias"]        # [N]

    B, S, K = hidden_states.shape
    N = w.shape[0]
    assert input_tensor.shape == (B, S, N)
    M = B * S

    # --- Row (token) tiling: big tiles, no divisibility requirement on M. ---
    tm_eff = _round_up(max(8, min(tm, _round_up(M, 8))), 8)
    nm = pl.cdiv(M, tm_eff)
    # v7x has 2 TensorCores: keep at least 2 parallel grid steps when there is
    # enough work to shard.
    if nm == 1 and M >= 256:
        tm_eff = _round_up(pl.cdiv(M, 2), 8)
        nm = pl.cdiv(M, tm_eff)

    # --- K (reduction) tiling: only when it divides evenly (e.g. 3072/512). ---
    tk_eff = tk if (K % tk == 0) else K
    nk = K // tk_eff

    # --- Lane-dense output: pad feature axis to a multiple of 128. ---
    n_pad = _round_up(N, 128)
    pad_n = n_pad - N

    x2d = hidden_states.reshape(M, K)
    r2d = input_tensor.reshape(M, N)
    if pad_n:
        w_p = jnp.pad(w, ((0, pad_n), (0, 0)))
        b_p = jnp.pad(b, ((0, pad_n),))
        g_p = jnp.pad(gamma, ((0, pad_n),))
        be_p = jnp.pad(beta, ((0, pad_n),))
        r_p = jnp.pad(r2d, ((0, 0), (0, pad_n)))
    else:
        w_p, b_p, g_p, be_p, r_p = w, b, gamma, beta, r2d

    b2d = b_p.reshape(1, n_pad)
    g2d = g_p.reshape(1, n_pad)
    be2d = be_p.reshape(1, n_pad)

    itemsize = jnp.dtype(hidden_states.dtype).itemsize
    cost = pl.CostEstimate(
        flops=int(2 * M * K * N),
        transcendentals=int(M),
        bytes_accessed=int((M * K + N * K + 2 * M * N + 3 * N) * itemsize),
    )

    kernel = functools.partial(_qformer_output_kernel, eps=eps,
                               n_actual=N, n_padded=n_pad)

    out2d = pl.pallas_call(
        kernel,
        out_shape=jax.ShapeDtypeStruct((M, n_pad), hidden_states.dtype),
        grid_spec=pltpu.PrefetchScalarGridSpec(
            num_scalar_prefetch=0,
            grid=(nm, nk),
            in_specs=[
                pl.BlockSpec((tm_eff, tk_eff), lambda i, k: (i, k)),   # x tile
                pl.BlockSpec((n_pad, tk_eff), lambda i, k: (0, k)),    # W (native [N, K])
                pl.BlockSpec((1, n_pad), lambda i, k: (0, 0)),         # bias
                pl.BlockSpec((tm_eff, n_pad), lambda i, k: (i, 0)),    # residual tile
                pl.BlockSpec((1, n_pad), lambda i, k: (0, 0)),         # LN gamma
                pl.BlockSpec((1, n_pad), lambda i, k: (0, 0)),         # LN beta
            ],
            out_specs=pl.BlockSpec((tm_eff, n_pad), lambda i, k: (i, 0)),
            scratch_shapes=[pltpu.VMEM((tm_eff, n_pad), jnp.float32)],
        ),
        compiler_params=pltpu.CompilerParams(
            dimension_semantics=("parallel", "arbitrary"),
            vmem_limit_bytes=64 * 1024 * 1024,
        ),
        cost_estimate=cost,
    )(x2d, w_p, b2d, r_p, g2d, be2d)

    if pad_n:
        out2d = out2d[:, :N]
    return out2d.reshape(B, S, N)


def _reference(hidden_states, input_tensor, params, eps=1e-12):
    h = hidden_states @ params["dense_weight"].T + params["dense_bias"]
    h = h + input_tensor
    mean = jnp.mean(h, axis=-1, keepdims=True)
    var = jnp.mean((h - mean) ** 2, axis=-1, keepdims=True)
    normed = (h - mean) * jax.lax.rsqrt(var + eps)
    return normed * params["ln_weight"] + params["ln_bias"]


if __name__ == "__main__":
    EPS = 1e-12
    key = jax.random.PRNGKey(0)
    k_a, k_b = jax.random.split(key)

    def make_case(k, B, S, K, N):
        k1, k2, k3, k4, k5, k6 = jax.random.split(k, 6)
        hs = jax.random.normal(k1, (B, S, K), dtype=jnp.float32)
        it = jax.random.normal(k2, (B, S, N), dtype=jnp.float32)
        params = {
            "dense_weight": jax.random.normal(k3, (N, K), jnp.float32) * 0.05,
            "dense_bias": jax.random.normal(k4, (N,), jnp.float32) * 0.05,
            "ln_weight": 1.0 + 0.1 * jax.random.normal(k5, (N,), jnp.float32),
            "ln_bias": 0.1 * jax.random.normal(k6, (N,), jnp.float32),
        }
        return hs, it, params

    # Case 1: toy config consistent with the module (intermediate=64 -> hidden=32).
    hs, it, params = make_case(k_a, 2, 8, 64, 32)
    out = chexagent_qformer_output(hs, it, params, eps=EPS)
    jax.block_until_ready(out)
    ref = _reference(hs, it, params, eps=EPS)
    assert out.shape == it.shape
    assert jnp.allclose(out, ref, atol=1e-5, rtol=1e-5), "case 1 mismatch vs reference"

    # Case 2: exercises K tiling (nk=2), a non-divisible token count (partial
    # last row block) and lane-padding of the hidden dim (96 -> 128).
    hs2, it2, params2 = make_case(k_b, 2, 20, 256, 96)
    out2 = chexagent_qformer_output(hs2, it2, params2, eps=EPS, tm=16, tk=128)
    jax.block_until_ready(out2)
    ref2 = _reference(hs2, it2, params2, eps=EPS)
    assert out2.shape == it2.shape
    assert jnp.allclose(out2, ref2, atol=1e-5, rtol=1e-5), "case 2 mismatch vs reference"

    print("KERNEL_OK")
</pallas_src>

<mosaic_0001>
module attributes {stable_mosaic.version = 11 : i64} {
  func.func @_qformer_output_kernel(%arg0: i32, %arg1: i32, %arg2: memref<16x64xf32, #tpu.memory_space<vmem>>, %arg3: memref<128x64xf32, #tpu.memory_space<vmem>>, %arg4: memref<1x128xf32, #tpu.memory_space<vmem>>, %arg5: memref<16x128xf32, #tpu.memory_space<vmem>>, %arg6: memref<1x128xf32, #tpu.memory_space<vmem>>, %arg7: memref<1x128xf32, #tpu.memory_space<vmem>>, %arg8: memref<16x128xf32, #tpu.memory_space<vmem>>, %arg9: memref<16x128xf32, #tpu.memory_space<vmem>>) attributes {dimension_semantics = [#tpu.dimension_semantics<parallel>, #tpu.dimension_semantics<arbitrary>], iteration_bounds = array<i64: 1, 1>, scalar_prefetch = 0 : i64, scratch_operands = 1 : i64, tpu.core_type = #tpu.core_type<tc>, window_params = [{transform_indices = @transform_0, window_bounds = array<i64: 16, 64>}, {transform_indices = @transform_1, window_bounds = array<i64: 128, 64>}, {pipeline_mode = #tpu.pipeline_mode<synchronous>, transform_indices = @transform_2, window_bounds = array<i64: 1, 128>}, {transform_indices = @transform_3, window_bounds = array<i64: 16, 128>}, {pipeline_mode = #tpu.pipeline_mode<synchronous>, transform_indices = @transform_4, window_bounds = array<i64: 1, 128>}, {pipeline_mode = #tpu.pipeline_mode<synchronous>, transform_indices = @transform_5, window_bounds = array<i64: 1, 128>}, {transform_indices = @transform_6, window_bounds = array<i64: 16, 128>}]} {
    %c0_i32 = arith.constant 0 : i32
    %0 = arith.cmpi eq, %arg1, %c0_i32 : i32
    %1 = arith.extui %0 : i1 to i32
    %c0_i32_0 = arith.constant 0 : i32
    %2 = arith.cmpi ne, %1, %c0_i32_0 : i32
    scf.if %2 {
      %cst_10 = arith.constant 0.000000e+00 : f32
      %12 = vector.broadcast %cst_10 : f32 to vector<16x128xf32>
      %c0_11 = arith.constant 0 : index
      %c0_12 = arith.constant 0 : index
      %13 = vector.load %arg9[%c0_11, %c0_12] : memref<16x128xf32, #tpu.memory_space<vmem>>, vector<16x128xf32>
      tpu.vector_store %arg9[%c0_11, %c0_12], %12 {strides = array<i32>} : memref<16x128xf32, #tpu.memory_space<vmem>>, vector<16x128xf32>,
    } else {
    }
    %c0 = arith.constant 0 : index
    %c0_1 = arith.constant 0 : index
    %3 = vector.load %arg9[%c0, %c0_1] : memref<16x128xf32, #tpu.memory_space<vmem>>, vector<16x128xf32>
    %c0_2 = arith.constant 0 : index
    %c0_3 = arith.constant 0 : index
    %4 = vector.load %arg2[%c0_2, %c0_3] : memref<16x64xf32, #tpu.memory_space<vmem>>, vector<16x64xf32>
    %c0_4 = arith.constant 0 : index
    %c0_5 = arith.constant 0 : index
    %5 = vector.load %arg3[%c0_4, %c0_5] : memref<128x64xf32, #tpu.memory_space<vmem>>, vector<128x64xf32>
    %cst = arith.constant dense<0.000000e+00> : vector<16x128xf32>
    %6 = tpu.matmul %4, %5, %cst {dimension_numbers = #tpu.dot_dimension_numbers<[1], [1], [0], [0], [0, 0, 1, 0], [], []>} : vector<16x64xf32>, vector<128x64xf32>, vector<16x128xf32> -> vector<16x128xf32>
    %7 = arith.addf %3, %6 : vector<16x128xf32>
    %c0_6 = arith.constant 0 : index
    %c0_7 = arith.constant 0 : index
    %8 = vector.load %arg9[%c0_6, %c0_7] : memref<16x128xf32, #tpu.memory_space<vmem>>, vector<16x128xf32>
    tpu.vector_store %arg9[%c0_6, %c0_7], %7 {strides = array<i32>} : memref<16x128xf32, #tpu.memory_space<vmem>>, vector<16x128xf32>,
    %c0_i32_8 = arith.constant 0 : i32
    %9 = arith.cmpi eq, %arg1, %c0_i32_8 : i32
    %10 = arith.extui %9 : i1 to i32
    %c0_i32_9 = arith.constant 0 : i32
    %11 = arith.cmpi ne, %10, %c0_i32_9 : i32
    scf.if %11 {
      %c0_10 = arith.constant 0 : index
      %c0_11 = arith.constant 0 : index
      %12 = vector.load %arg9[%c0_10, %c0_11] : memref<16x128xf32, #tpu.memory_space<vmem>>, vector<16x128xf32>
      %c0_12 = arith.constant 0 : index
      %c0_13 = arith.constant 0 : index
      %13 = vector.load %arg4[%c0_12, %c0_13] : memref<1x128xf32, #tpu.memory_space<vmem>>, vector<1x128xf32>
      %14 = vector.broadcast %13 : vector<1x128xf32> to vector<16x128xf32>
      %15 = arith.addf %12, %14 : vector<16x128xf32>
      %c0_14 = arith.constant 0 : index
      %c0_15 = arith.constant 0 : index
      %16 = vector.load %arg5[%c0_14, %c0_15] : memref<16x128xf32, #tpu.memory_space<vmem>>, vector<16x128xf32>
      %17 = arith.addf %15, %16 : vector<16x128xf32>
      %18 = tpu.iota {dimensions = array<i32: 1>} : vector<16x128xi32>
      %c32_i32 = arith.constant 32 : i32
      %19 = vector.broadcast %c32_i32 : i32 to vector<16x128xi32>
      %20 = arith.cmpi slt, %18, %19 : vector<16x128xi32>
      %cst_16 = arith.constant dense<0.000000e+00> : vector<16xf32>
      %21 = vector.multi_reduction <add>, %17, %cst_16 [1] : vector<16x128xf32> to vector<16xf32>
      %22 = vector.shape_cast %21 : vector<16xf32> to vector<16x1xf32>
      %cst_17 = arith.constant 3.125000e-02 : f32
      %23 = vector.broadcast %cst_17 : f32 to vector<16x1xf32>
      %24 = arith.mulf %22, %23 : vector<16x1xf32>
      %25 = vector.broadcast %24 : vector<16x1xf32> to vector<16x128xf32>
      %26 = arith.subf %17, %25 : vector<16x128xf32>
      %cst_18 = arith.constant 0.000000e+00 : f32
      %27 = vector.broadcast %cst_18 : f32 to vector<16x128xf32>
      %28 = arith.select %20, %26, %27 : vector<16x128xi1>, vector<16x128xf32>
      %29 = arith.mulf %28, %28 : vector<16x128xf32>
      %cst_19 = arith.constant dense<0.000000e+00> : vector<16xf32>
      %30 = vector.multi_reduction <add>, %29, %cst_19 [1] : vector<16x128xf32> to vector<16xf32>
      %31 = vector.shape_cast %30 : vector<16xf32> to vector<16x1xf32>
      %cst_20 = arith.constant 3.125000e-02 : f32
      %32 = vector.broadcast %cst_20 : f32 to vector<16x1xf32>
      %33 = arith.mulf %31, %32 : vector<16x1xf32>
      %cst_21 = arith.constant 9.99999996E-13 : f32
      %34 = vector.broadcast %cst_21 : f32 to vector<16x1xf32>
      %35 = arith.addf %33, %34 : vector<16x1xf32>
      %36 = math.rsqrt %35 : vector<16x1xf32>
      %37 = vector.broadcast %36 : vector<16x1xf32> to vector<16x128xf32>
      %38 = arith.mulf %28, %37 : vector<16x128xf32>
      %c0_22 = arith.constant 0 : index
      %c0_23 = arith.constant 0 : index
      %39 = vector.load %arg6[%c0_22, %c0_23] : memref<1x128xf32, #tpu.memory_space<vmem>>, vector<1x128xf32>
      %40 = vector.broadcast %39 : vector<1x128xf32> to vector<16x128xf32>
      %41 = arith.mulf %38, %40 : vector<16x128xf32>
      %c0_24 = arith.constant 0 : index
      %c0_25 = arith.constant 0 : index
      %42 = vector.load %arg7[%c0_24, %c0_25] : memref<1x128xf32, #tpu.memory_space<vmem>>, vector<1x128xf32>
      %43 = vector.broadcast %42 : vector<1x128xf32> to vector<16x128xf32>
      %44 = arith.addf %41, %43 : vector<16x128xf32>
      %c0_26 = arith.constant 0 : index
      %c0_27 = arith.constant 0 : index
      %45 = vector.load %arg8[%c0_26, %c0_27] : memref<16x128xf32, #tpu.memory_space<vmem>>, vector<16x128xf32>
      tpu.vector_store %arg8[%c0_26, %c0_27], %44 {strides = array<i32>} : memref<16x128xf32, #tpu.memory_space<vmem>>, vector<16x128xf32>,
    } else {
    }
    return
  }
  func.func @transform_0(%arg0: i32, %arg1: i32) -> (i32, i32) {
    %c0_i32 = arith.constant 0 : i32
    return %arg0, %arg1 : i32, i32
  }
  func.func @transform_1(%arg0: i32, %arg1: i32) -> (i32, i32) {
    %c0_i32 = arith.constant 0 : i32
    %c0_i32_0 = arith.constant 0 : i32
    return %c0_i32, %arg1 : i32, i32
  }
  func.func @transform_2(%arg0: i32, %arg1: i32) -> (i32, i32) {
    %c0_i32 = arith.constant 0 : i32
    %c0_i32_0 = arith.constant 0 : i32
    %c0_i32_1 = arith.constant 0 : i32
    return %c0_i32, %c0_i32_0 : i32, i32
  }
  func.func @transform_3(%arg0: i32, %arg1: i32) -> (i32, i32) {
    %c0_i32 = arith.constant 0 : i32
    %c0_i32_0 = arith.constant 0 : i32
    return %arg0, %c0_i32 : i32, i32
  }
  func.func @transform_4(%arg0: i32, %arg1: i32) -> (i32, i32) {
    %c0_i32 = arith.constant 0 : i32
    %c0_i32_0 = arith.constant 0 : i32
    %c0_i32_1 = arith.constant 0 : i32
    return %c0_i32, %c0_i32_0 : i32, i32
  }
  func.func @transform_5(%arg0: i32, %arg1: i32) -> (i32, i32) {
    %c0_i32 = arith.constant 0 : i32
    %c0_i32_0 = arith.constant 0 : i32
    %c0_i32_1 = arith.constant 0 : i32
    return %c0_i32, %c0_i32_0 : i32, i32
  }
  func.func @transform_6(%arg0: i32, %arg1: i32) -> (i32, i32) {
    %c0_i32 = arith.constant 0 : i32
    %c0_i32_0 = arith.constant 0 : i32
    return %arg0, %c0_i32 : i32, i32
  }
}

</mosaic_0001>

<bundles_post_ra>
// kernel: tpu_custom_call.1
= control target key start
LH: loop header
LB: loop body
LE: loop exit
PB: predicated region body
PF: predicated region fallthrough
CT: control target
= control target key end

     0   :  { %vm50_vm0 = vcmask 523264   ;;  %s438_s0 = inlined_call_operand.vmem [shape: f32[16,64], index: 0, kind: input, shape index: {}]   ;;  %s439_s1 = inlined_call_operand.vmem [shape: f32[128,64], index: 1, kind: input, shape index: {}]   ;;  %s440_s2 = inlined_call_operand.vmem [shape: f32[1,128], index: 2, kind: input, shape index: {}]   ;;  %s441_s3 = inlined_call_operand.vmem [shape: f32[16,128], index: 3, kind: input, shape index: {}]   ;;  %s442_s4 = inlined_call_operand.vmem [shape: f32[1,128], index: 4, kind: input, shape index: {}]   ;;  %s443_s5 = inlined_call_operand.vmem [shape: f32[1,128], index: 5, kind: input, shape index: {}]   ;;  %s444_s6 = inlined_call_operand.hbm [shape: f32[16,128], index: 6, kind: output, shape index: {}]  }
   0x1   :  { %v49_v0 = vld [vmem:[%s439_s1 + $0x78] sm:$0xff]  ;;  %v48_v1 = vld [vmem:[%s439_s1 + $0x70] sm:$0xff] }
   0x2   :  { %224 = vmatpush.xpose.msk.msra.mxu0 %vm50_vm0, %v49_v0  ;;  %242 = vmatpush.xpose.msk.msra.mxu1 %vm50_vm0, %v49_v0 }
   0x3   :  { %11 = vsyncpa [#allocation4], 0  ;;  %v47_v2 = vld [vmem:[%s439_s1 + $0x68] sm:$0xff]  ;;  %v46_v3 = vld [vmem:[%s439_s1 + $0x60] sm:$0xff]  ;;  %v147_v27 = vlaneseq  ;;  %s212_s18 = sshll.u32 %s444_s6, 4  ;;  %s296_s19 = smov 8   ;;  %s213_s18 = int_to_ptr.hbm [resolvable:$true] %s212_s18 }
   0x4   :  { %v45_v4 = vld [vmem:[%s439_s1 + $0x58] sm:$0xff]  ;;  %v44_v5 = vld [vmem:[%s439_s1 + $0x50] sm:$0xff]  ;;  %v43_v6 = vld [vmem:[%s439_s1 + $0x48] sm:$0xff] }
   0x5   :  { %v42_v7 = vld [vmem:[%s439_s1 + $0x40] sm:$0xff]  ;;  %v41_v8 = vld [vmem:[%s439_s1 + $0x38] sm:$0xff]  ;;  %v40_v9 = vld [vmem:[%s439_s1 + $0x30] sm:$0xff]  ;;  %v148_v28 = vand.u32 127, %v147_v27 }
   0x6   :  { %225 = vmatpush.xpose.msk.msra.mxu0 %vm50_vm0, %v48_v1  ;;  %243 = vmatpush.xpose.msk.msra.mxu1 %vm50_vm0, %v48_v1  ;;  %v39_v10 = vld [vmem:[%s439_s1 + $0x28] sm:$0xff]  ;;  %v38_v11 = vld [vmem:[%s439_s1 + $0x20] sm:$0xff]  ;;  %v37_v12 = vld [vmem:[%s439_s1 + $0x18] sm:$0xff] }
   0x7   :  { %v36_v13 = vld [vmem:[%s439_s1 + $0x10] sm:$0xff]  ;;  %v35_v14 = vld [vmem:[%s439_s1 + $0x8] sm:$0xff]  ;;  %v34_v15 = vld [vmem:[%s439_s1] sm:$0xff]  ;;  %vm149_vm1 = vcmp.lt.s32.totalorder %v148_v28, 32 }
   0x8   :  { %v32_v16 = vld [vmem:[%s438_s0] sm:$0xff]  ;;  %v33_v17 = vld [vmem:[%s438_s0 + $0x8] sm:$0xff] }
   0x9   :  { %v261_v18 = vld [vmem:[%s440_s2] ss:$0 sm:$0xff]  ;;  %v144_v25 = vld [vmem:[%s441_s3 + $0x8] sm:$0xff] }
   0xa   :  { %226 = vmatpush.xpose.msk.msra.mxu0 %vm50_vm0, %v47_v2  ;;  %244 = vmatpush.xpose.msk.msra.mxu1 %vm50_vm0, %v47_v2  ;;  %v143_v20 = vld [vmem:[%s441_s3] sm:$0xff] }
   0xb   :  { %v262_v53 = vld [vmem:[%s442_s4] ss:$0 sm:$0xff]  ;;  %s294_s4 = smov [#allocation3]  }
   0xc   :  { %v263_v57 = vld [vmem:[%s443_s5] ss:$0 sm:$0xff]  ;;  %s210_s15 = sshll.u32 %s294_s4, 4  ;;  %s295_s5 = smov 128   ;;  %s211_s15 = int_to_ptr.vmem [resolvable:$true] %s210_s15 }
   0xe   :  { %227 = vmatpush.xpose.msk.msra.mxu0 %vm50_vm0, %v46_v3  ;;  %245 = vmatpush.xpose.msk.msra.mxu1 %vm50_vm0, %v46_v3 }
  0x12   :  { %228 = vmatpush.xpose.msk.msra.mxu0 %vm50_vm0, %v45_v4  ;;  %246 = vmatpush.xpose.msk.msra.mxu1 %vm50_vm0, %v45_v4 }
  0x16   :  { %229 = vmatpush.xpose.msk.msra.mxu0 %vm50_vm0, %v44_v5  ;;  %247 = vmatpush.xpose.msk.msra.mxu1 %vm50_vm0, %v44_v5 }
  0x1a   :  { %230 = vmatpush.xpose.msk.msra.mxu0 %vm50_vm0, %v43_v6  ;;  %248 = vmatpush.xpose.msk.msra.mxu1 %vm50_vm0, %v43_v6 }
  0x1e   :  { %231 = vmatpush.xpose.msk.msra.mxu0 %vm50_vm0, %v42_v7  ;;  %249 = vmatpush.xpose.msk.msra.mxu1 %vm50_vm0, %v42_v7 }
  0x22   :  { %232 = vmatpush.xpose.msk.msra.mxu0 %vm50_vm0, %v41_v8  ;;  %250 = vmatpush.xpose.msk.msra.mxu1 %vm50_vm0, %v41_v8 }
  0x26   :  { %233 = vmatpush.xpose.msk.msra.mxu0 %vm50_vm0, %v40_v9  ;;  %251 = vmatpush.xpose.msk.msra.mxu1 %vm50_vm0, %v40_v9 }
  0x2a   :  { %234 = vmatpush.xpose.msk.msra.mxu0 %vm50_vm0, %v39_v10  ;;  %252 = vmatpush.xpose.msk.msra.mxu1 %vm50_vm0, %v39_v10 }
  0x2e   :  { %235 = vmatpush.xpose.msk.msra.mxu0 %vm50_vm0, %v38_v11  ;;  %253 = vmatpush.xpose.msk.msra.mxu1 %vm50_vm0, %v38_v11 }
  0x32   :  { %236 = vmatpush.xpose.msk.msra.mxu0 %vm50_vm0, %v37_v12  ;;  %254 = vmatpush.xpose.msk.msra.mxu1 %vm50_vm0, %v37_v12 }
  0x36   :  { %237 = vmatpush.xpose.msk.msra.mxu0 %vm50_vm0, %v36_v13  ;;  %255 = vmatpush.xpose.msk.msra.mxu1 %vm50_vm0, %v36_v13 }
  0x3a   :  { %238 = vmatpush.xpose.msk.msra.mxu0 %vm50_vm0, %v35_v14  ;;  %256 = vmatpush.xpose.msk.msra.mxu1 %vm50_vm0, %v35_v14 }
  0x3e   :  { %239 = vmatpush.xpose.msk.msra.mxu0 %vm50_vm0, %v34_v15  ;;  %257 = vmatpush.xpose.msk.msra.mxu1 %vm50_vm0, %v34_v15 }
  0x41   :  { %240 = vmatmul.msk.f32.vlgmr.msra.gmra.mxu0 %vm50_vm0, %v32_v16  ;;  %241 = vmatmul.msk.f32.vlgmr.msra.gmra.mxu1 %vm50_vm0, %v33_v17 }
  0xbe   :  { %v122_v19 = vpop.f32.mrf.mxu0  ;;  %v125_v22 = vpop.f32.mrf.mxu1 }
  0xbf   :  { %v141_v21 = vadd.f32 %v261_v18, %v122_v19  ;;  %v142_v24 = vadd.f32 %v261_v18, %v125_v22 }
  0xc1   :  { %v145_v23 = vadd.f32 %v143_v20, %v141_v21  ;;  %v146_v26 = vadd.f32 %v144_v25, %v142_v24 }
  0xc3   :  { %150 = vadd.xlane.f32.xlu0 %v145_v23 }
  0xcb   :  { %152 = vadd.xlane.f32.xlu0 %v146_v26 }
 0x136   :  { %v151_v29 = vpop.xlane.xlu0 %150 }
 0x137   :  { %v154_v30 = vmul.f32 0.03125, %v151_v29 }
 0x139   :  { %v156_v31 = vsub.f32 %v145_v23, %v154_v30 }
 0x13b   :  { %v158_v32 = vsel %vm149_vm1, %v156_v31, 0.0 }
 0x13c   :  { %v160_v33 = vmul.f32 %v158_v32, %v158_v32 }
 0x13e   :  { %162 = vadd.xlane.f32.xlu1 %v160_v33  ;;  %v153_v34 = vpop.xlane.xlu0 %152 }
 0x13f   :  { %v155_v35 = vmul.f32 0.03125, %v153_v34 }
 0x141   :  { %v157_v36 = vsub.f32 %v146_v26, %v155_v35 }
 0x143   :  { %v159_v37 = vsel %vm149_vm1, %v157_v36, 0.0 }
 0x144   :  { %v161_v38 = vmul.f32 %v159_v37, %v159_v37 }
 0x146   :  { %164 = vadd.xlane.f32.xlu1 %v161_v38 }
 0x1b1   :  { %v163_v39 = vpop.xlane.xlu1 %162 }
 0x1b2   :  { %v166_v40 = vmul.f32 0.03125, %v163_v39 }
 0x1b4   :  { %v168_v41 = vadd.f32 1e-12, %v166_v40 }
 0x1b6   :  { %264 = vrsqrt.f32 %v168_v41  ;;  %vm176_vm3 = vweird.f32 %v168_v41 }
 0x1b9   :  { %v165_v42 = vpop.xlane.xlu1 %164 }
 0x1ba   :  { %v167_v43 = vmul.f32 0.03125, %v165_v42 }
 0x1bc   :  { %v265_v44 = vpop.eup %264  ;;  %v169_v45 = vadd.f32 1e-12, %v167_v43 }
 0x1bd   :  { %v171_v46 = vmul.f32 %v265_v44, %v168_v41  ;;  %vm177_vm2 = vweird.f32 %v265_v44 }
 0x1be   :  { %266 = vrsqrt.f32 %v169_v45  ;;  %vm178_vm4 = vmor %vm176_vm3, %vm177_vm2  ;;  %vm186_vm6 = vweird.f32 %v169_v45 }
 0x1bf   :  { %v172_v47 = vmul.f32 %v265_v44, %v171_v46 }
 0x1c1   :  { %v173_v48 = vmul.f32 0.5, %v172_v47 }
 0x1c3   :  { %v174_v49 = vsub.f32 1.5, %v173_v48 }
 0x1c4   :  { %v267_v50 = vpop.eup %266 }
 0x1c5   :  { %v175_v51 = vmul.f32 %v265_v44, %v174_v49  ;;  %v181_v52 = vmul.f32 %v267_v50, %v169_v45  ;;  %vm187_vm5 = vweird.f32 %v267_v50 }
 0x1c6   :  { %vm188_vm7 = vmor %vm186_vm6, %vm187_vm5 }
 0x1c7   :  { %v179_v54 = vsel %vm178_vm4, %v265_v44, %v175_v51  ;;  %v182_v55 = vmul.f32 %v267_v50, %v181_v52 }
 0x1c8   :  { %v190_v56 = vmul.f32 %v179_v54, %v158_v32 }
 0x1c9   :  { %v183_v58 = vmul.f32 0.5, %v182_v55 }
 0x1ca   :  { %v196_v59 = vmul.f32 %v262_v53, %v190_v56 }
 0x1cb   :  { %v184_v60 = vsub.f32 1.5, %v183_v58 }
 0x1cc   :  { %v202_v61 = vadd.f32 %v263_v57, %v196_v59 }
 0x1cd   :  { %v185_v62 = vmul.f32 %v267_v50, %v184_v60 }
 0x1ce   :  { %204 = vst [vmem:[#allocation3] sm:$0xff] %v202_v61 }
 0x1cf   :  { %v189_v63 = vsel %vm188_vm7, %v267_v50, %v185_v62 }
 0x1d0   :  { %v191_v0 = vmul.f32 %v189_v63, %v159_v37 }
 0x1d2   :  { %v197_v1 = vmul.f32 %v262_v53, %v191_v0 }
 0x1d4   :  { %v203_v2 = vadd.f32 %v263_v57, %v197_v1 }
 0x1d6   :  { %205 = vst [vmem:[#allocation3 + $0x8] sm:$0xff] %v203_v2 }
 0x1d7   :  { %218 = dma.vmem_to_hbm [thread:$0]  %s211_s15, 256, %s213_s18, [#allocation4], %s295_s5, %s295_s5, %s296_s19  }
 0x1d8   :  { %292 = dma.done.wait [#allocation4], 256  }
 0x1d9   :  { %293 = vsyncadd [#allocation4], 4294967040 }
 0x1da   :  { %223 = vsyncpa [#allocation4], 1 }

</bundles_post_ra>
